<compile_context>
chip_gen: v6e
topology: v6e:2x2x1
jax: 0.10.0
libtpu: 0.0.40
codegen_flags: <defaults>
</compile_context>

<pallas_src>
import jax
import jax.numpy as jnp
import numpy as np
from jax import lax
from jax.experimental import pallas as pl
from jax.experimental.pallas import tpu as pltpu

_HIDDEN = 128
_NEG = -1e30  # padded-atom logit bias: exp underflows to exactly 0 -> no probability mass


def _round_up(n: int, m: int) -> int:
    return (n + m - 1) // m * m


def _default_block_rows() -> int:
    """Device-aware batch row tile: 256 fills v6e's 2x256 MXU; 128 elsewhere
    (v5e MXU is 4x128; on v7x smaller tiles keep n_tiles >= 2 so both cores work)."""
    try:
        kind = jax.devices()[0].device_kind.lower()
    except Exception:
        return 128
    if "v6" in kind:
        return 256
    return 128


# ----------------------------- Pallas kernel ------------------------------ #
def _categorical_kernel(x_ref, w1_ref, b1_ref, w2_ref, b2_ref, w3_ref, b3_ref,
                        sup_ref, q_ref):
    """Fused bf16-MXU MLP -> per-action softmax over padded atoms -> clamp(0.001)
    -> expectation over the support, accumulated into a lane-dense output slab."""
    f32 = jnp.float32
    tm = x_ref.shape[0]
    out_dim = w3_ref.shape[0]
    out_pad = q_ref.shape[1]

    # --- MLP trunk: bf16 operands on the MXU, f32 accumulation + f32 bias/ReLU ---
    h1 = jnp.dot(x_ref[...], w1_ref[...], preferred_element_type=f32) + b1_ref[...]
    h1 = jnp.maximum(h1, 0.0).astype(jnp.bfloat16)
    h2 = jnp.dot(h1, w2_ref[...], preferred_element_type=f32) + b2_ref[...]
    h2 = jnp.maximum(h2, 0.0).astype(jnp.bfloat16)

    sup = sup_ref[...]                                            # (1, atom_pad) f32
    lane = lax.broadcasted_iota(jnp.int32, (tm, out_pad), 1)

    # --- per-action head: bounds live vregs to a single (tm, 128) slab per step ---
    def per_action(a, acc):
        # layer-3 column block for action `a` (bf16 MXU, f32 acc) + padded bias
        logits = jnp.dot(h2, w3_ref[a], preferred_element_type=f32) + b3_ref[a]
        m = jnp.max(logits, axis=-1, keepdims=True)
        e = jnp.exp(logits - m)                                   # padded atoms -> exactly 0
        denom = jnp.sum(e, axis=-1, keepdims=True)                # >= 1 (max-subtracted)
        dist = jnp.maximum(e * pl.reciprocal(denom, approx=True), 0.001)
        # expectation on VPU/XLU; padded support columns are 0 so the clamp on pads is inert
        qa = jnp.sum(dist * sup, axis=-1, keepdims=True)          # (tm, 1)
        return acc + jnp.where(lane == a, qa, 0.0)

    acc0 = jnp.zeros((tm, out_pad), f32)
    q = lax.fori_loop(0, out_dim, per_action, acc0)
    q_ref[...] = q.astype(q_ref.dtype)                            # one lane-dense store


# -------------------- One-time parameter layout prep ----------------------- #
def prepare_params(params, support, out_dim: int, atom_size: int):
    """Hoisted out of the per-call path: pad/transposes/bf16 casts done once."""
    w1, b1, w2, b2, w3, b3 = params
    f32, bf16 = jnp.float32, jnp.bfloat16
    in_dim = w1.shape[0]
    in_pad = _round_up(in_dim, 128)
    atom_pad = _round_up(atom_size, 128)

    w1_p = jnp.pad(w1.astype(f32), ((0, in_pad - in_dim), (0, 0))).astype(bf16)
    w2_p = w2.astype(bf16)
    # (hidden, out_dim, atom) --pad atoms--> transpose to (out_dim, hidden, atom_pad)
    w3_p = jnp.transpose(
        jnp.pad(w3.astype(f32).reshape(_HIDDEN, out_dim, atom_size),
                ((0, 0), (0, 0), (0, atom_pad - atom_size))),
        (1, 0, 2)).astype(bf16)
    b3_p = jnp.pad(b3.astype(f32).reshape(out_dim, 1, atom_size),
                   ((0, 0), (0, 0), (0, atom_pad - atom_size)),
                   constant_values=_NEG)
    sup_row = jnp.pad(support.astype(f32).reshape(1, atom_size),
                      ((0, 0), (0, atom_pad - atom_size)))
    return (w1_p, b1.astype(f32), w2_p, b2.astype(f32), w3_p, b3_p, sup_row)


# ------------------------------ Host wrapper ------------------------------ #
def categorical_forward(x, prepped, *, block_rows=None):
    """x: (B, in_dim) f32, prepped = prepare_params(...). Returns q: (B, out_dim) f32."""
    w1_p, b1, w2_p, b2, w3_p, b3_p, sup_row = prepped
    B, in_dim = x.shape
    in_pad = w1_p.shape[0]
    out_dim, _, atom_pad = w3_p.shape
    out_pad = _round_up(out_dim, 128)

    if block_rows is None:
        block_rows = _default_block_rows()
    tm = min(block_rows, _round_up(B, 8))       # batch row tile (multiple of 8 sublanes)
    b_pad = _round_up(B, tm)
    n_tiles = b_pad // tm

    # Per-call data prep: only the batch is padded / cast (weights were prepped once).
    x_p = jnp.pad(x.astype(jnp.float32),
                  ((0, b_pad - B), (0, in_pad - in_dim))).astype(jnp.bfloat16)

    flops = 2 * b_pad * (in_pad * _HIDDEN + _HIDDEN * _HIDDEN
                         + _HIDDEN * out_dim * atom_pad)
    bytes_accessed = (2 * (b_pad * in_pad + in_pad * _HIDDEN + _HIDDEN * _HIDDEN
                           + out_dim * _HIDDEN * atom_pad)               # bf16 tensors
                      + 4 * (2 * _HIDDEN + out_dim * atom_pad + atom_pad
                             + b_pad * out_pad))                         # f32 biases/support/out
    cost = pl.CostEstimate(flops=int(flops),
                           transcendentals=int(b_pad * out_dim * (atom_pad + 1)),
                           bytes_accessed=int(bytes_accessed))

    q_pad = pl.pallas_call(
        _categorical_kernel,
        out_shape=jax.ShapeDtypeStruct((b_pad, out_pad), jnp.float32),
        grid=(n_tiles,),
        in_specs=[
            pl.BlockSpec((tm, in_pad), lambda i: (i, 0)),                 # x (batch-tiled, bf16)
            pl.BlockSpec((in_pad, _HIDDEN), lambda i: (0, 0)),            # w1 (resident, bf16)
            pl.BlockSpec((1, _HIDDEN), lambda i: (0, 0)),                 # b1 (f32)
            pl.BlockSpec((_HIDDEN, _HIDDEN), lambda i: (0, 0)),           # w2 (bf16)
            pl.BlockSpec((1, _HIDDEN), lambda i: (0, 0)),                 # b2 (f32)
            pl.BlockSpec((out_dim, _HIDDEN, atom_pad), lambda i: (0, 0, 0)),  # w3 (bf16, per-action)
            pl.BlockSpec((out_dim, 1, atom_pad), lambda i: (0, 0, 0)),    # b3 (f32, -1e30 pads)
            pl.BlockSpec((1, atom_pad), lambda i: (0, 0)),                # support row (f32)
        ],
        out_specs=pl.BlockSpec((tm, out_pad), lambda i: (i, 0)),
        compiler_params=pltpu.CompilerParams(dimension_semantics=("parallel",)),
        cost_estimate=cost,
    )(x_p, w1_p, b1, w2_p, b2, w3_p, b3_p, sup_row)

    return q_pad[:B, :out_dim]


# -------------------------- Deterministic init ---------------------------- #
def xavier_uniform(key, fan_in, fan_out):
    # matches nn.init.xavier_uniform_ (gain=1); stored as (in, out) layout
    limit = float(np.sqrt(6.0 / (fan_in + fan_out)))
    return jax.random.uniform(key, (fan_in, fan_out), jnp.float32, -limit, limit)


def linear_bias(key, fan_in, fan_out):
    # matches default torch.nn.Linear bias init: U(-1/sqrt(fan_in), 1/sqrt(fan_in))
    bound = 1.0 / float(np.sqrt(fan_in))
    return jax.random.uniform(key, (1, fan_out), jnp.float32, -bound, bound)


def make_params(key, in_dim, out_dim, atom_size):
    k = jax.random.split(key, 6)
    w1 = xavier_uniform(k[0], in_dim, _HIDDEN)
    b1 = linear_bias(k[1], in_dim, _HIDDEN)
    w2 = xavier_uniform(k[2], _HIDDEN, _HIDDEN)
    b2 = linear_bias(k[3], _HIDDEN, _HIDDEN)
    w3 = xavier_uniform(k[4], _HIDDEN, out_dim * atom_size)
    b3 = linear_bias(k[5], _HIDDEN, out_dim * atom_size)
    return (w1, b1, w2, b2, w3, b3)


def reference_forward(x, params, support, out_dim, atom_size):
    """Pure-JAX f32 reference mirroring the PyTorch module."""
    w1, b1, w2, b2, w3, b3 = params
    hp = jax.lax.Precision.HIGHEST
    h1 = jax.nn.relu(jnp.dot(x, w1, precision=hp) + b1)
    h2 = jax.nn.relu(jnp.dot(h1, w2, precision=hp) + b2)
    out = jnp.dot(h2, w3, precision=hp) + b3
    q_atoms = out.reshape(-1, out_dim, atom_size)
    dist = jax.nn.softmax(q_atoms, axis=-1)
    dist = jnp.maximum(dist, 0.001)            # clamp(min=0.001), no renormalization
    return jnp.sum(dist * support.reshape(1, 1, atom_size), axis=2)


# --------------------------------- Main ------------------------------------ #
if __name__ == "__main__":
    BATCH = 8
    IN_DIM = 16
    OUT_DIM = 4
    ATOM_SIZE = 51  # standard C51

    key = jax.random.PRNGKey(0)
    k_x, k_p = jax.random.split(key)

    x = jax.random.normal(k_x, (BATCH, IN_DIM), jnp.float32)
    params = make_params(k_p, IN_DIM, OUT_DIM, ATOM_SIZE)
    support = jnp.linspace(-10.0, 10.0, ATOM_SIZE, dtype=jnp.float32)

    # One-time parameter layout prep (hoisted out of the per-call path).
    prepped = jax.block_until_ready(prepare_params(params, support, OUT_DIM, ATOM_SIZE))

    fwd = jax.jit(categorical_forward)
    q = jax.block_until_ready(fwd(x, prepped))

    q_ref = reference_forward(x, params, support, OUT_DIM, ATOM_SIZE)
    assert q.shape == (BATCH, OUT_DIM)
    # bf16 MXU operands (f32 accumulation) introduce ~0.1-1% deviation vs the f32 reference.
    np.testing.assert_allclose(np.asarray(q), np.asarray(q_ref), rtol=3e-2, atol=3e-2)

    print("KERNEL_OK")
</pallas_src>

<mosaic_0001>
module attributes {stable_mosaic.version = 11 : i64} {
  func.func @_categorical_kernel(%arg0: i32, %arg1: memref<8x128xbf16, #tpu.memory_space<vmem>>, %arg2: memref<128x128xbf16, #tpu.memory_space<vmem>>, %arg3: memref<1x128xf32, #tpu.memory_space<vmem>>, %arg4: memref<128x128xbf16, #tpu.memory_space<vmem>>, %arg5: memref<1x128xf32, #tpu.memory_space<vmem>>, %arg6: memref<4x128x128xbf16, #tpu.memory_space<vmem>>, %arg7: memref<4x1x128xf32, #tpu.memory_space<vmem>>, %arg8: memref<1x128xf32, #tpu.memory_space<vmem>>, %arg9: memref<8x128xf32, #tpu.memory_space<vmem>>) attributes {dimension_semantics = [#tpu.dimension_semantics<parallel>], iteration_bounds = array<i64: 1>, scalar_prefetch = 0 : i64, scratch_operands = 0 : i64, tpu.core_type = #tpu.core_type<tc>, window_params = [{transform_indices = @transform_0, window_bounds = array<i64: 8, 128>}, {pipeline_mode = #tpu.pipeline_mode<synchronous>, transform_indices = @transform_1, window_bounds = array<i64: 128, 128>}, {pipeline_mode = #tpu.pipeline_mode<synchronous>, transform_indices = @transform_2, window_bounds = array<i64: 1, 128>}, {pipeline_mode = #tpu.pipeline_mode<synchronous>, transform_indices = @transform_3, window_bounds = array<i64: 128, 128>}, {pipeline_mode = #tpu.pipeline_mode<synchronous>, transform_indices = @transform_4, window_bounds = array<i64: 1, 128>}, {pipeline_mode = #tpu.pipeline_mode<synchronous>, transform_indices = @transform_5, window_bounds = array<i64: 4, 128, 128>}, {pipeline_mode = #tpu.pipeline_mode<synchronous>, transform_indices = @transform_6, window_bounds = array<i64: 4, 1, 128>}, {pipeline_mode = #tpu.pipeline_mode<synchronous>, transform_indices = @transform_7, window_bounds = array<i64: 1, 128>}, {transform_indices = @transform_8, window_bounds = array<i64: 8, 128>}]} {
    %c0 = arith.constant 0 : index
    %c0_0 = arith.constant 0 : index
    %0 = vector.load %arg1[%c0, %c0_0] : memref<8x128xbf16, #tpu.memory_space<vmem>>, vector<8x128xbf16>
    %c0_1 = arith.constant 0 : index
    %c0_2 = arith.constant 0 : index
    %1 = vector.load %arg2[%c0_1, %c0_2] : memref<128x128xbf16, #tpu.memory_space<vmem>>, vector<128x128xbf16>
    %cst = arith.constant dense<0.000000e+00> : vector<8x128xf32>
    %2 = tpu.matmul %0, %1, %cst {dimension_numbers = #tpu.dot_dimension_numbers<[1], [0], [0], [1], [0, 0, 1, 1], [], []>} : vector<8x128xbf16>, vector<128x128xbf16>, vector<8x128xf32> -> vector<8x128xf32>
    %c0_3 = arith.constant 0 : index
    %c0_4 = arith.constant 0 : index
    %3 = vector.load %arg3[%c0_3, %c0_4] : memref<1x128xf32, #tpu.memory_space<vmem>>, vector<1x128xf32>
    %4 = vector.broadcast %3 : vector<1x128xf32> to vector<8x128xf32>
    %5 = arith.addf %2, %4 : vector<8x128xf32>
    %cst_5 = arith.constant 0.000000e+00 : f32
    %6 = vector.broadcast %cst_5 : f32 to vector<8x128xf32>
    %7 = arith.maximumf %5, %6 : vector<8x128xf32>
    %8 = arith.truncf %7 : vector<8x128xf32> to vector<8x128xbf16>
    %c0_6 = arith.constant 0 : index
    %c0_7 = arith.constant 0 : index
    %9 = vector.load %arg4[%c0_6, %c0_7] : memref<128x128xbf16, #tpu.memory_space<vmem>>, vector<128x128xbf16>
    %cst_8 = arith.constant dense<0.000000e+00> : vector<8x128xf32>
    %10 = tpu.matmul %8, %9, %cst_8 {dimension_numbers = #tpu.dot_dimension_numbers<[1], [0], [0], [1], [0, 0, 1, 1], [], []>} : vector<8x128xbf16>, vector<128x128xbf16>, vector<8x128xf32> -> vector<8x128xf32>
    %c0_9 = arith.constant 0 : index
    %c0_10 = arith.constant 0 : index
    %11 = vector.load %arg5[%c0_9, %c0_10] : memref<1x128xf32, #tpu.memory_space<vmem>>, vector<1x128xf32>
    %12 = vector.broadcast %11 : vector<1x128xf32> to vector<8x128xf32>
    %13 = arith.addf %10, %12 : vector<8x128xf32>
    %cst_11 = arith.constant 0.000000e+00 : f32
    %14 = vector.broadcast %cst_11 : f32 to vector<8x128xf32>
    %15 = arith.maximumf %13, %14 : vector<8x128xf32>
    %16 = arith.truncf %15 : vector<8x128xf32> to vector<8x128xbf16>
    %c0_12 = arith.constant 0 : index
    %c0_13 = arith.constant 0 : index
    %17 = vector.load %arg8[%c0_12, %c0_13] : memref<1x128xf32, #tpu.memory_space<vmem>>, vector<1x128xf32>
    %18 = tpu.iota {dimensions = array<i32: 1>} : vector<8x128xi32>
    %cst_14 = arith.constant 0.000000e+00 : f32
    %19 = vector.broadcast %cst_14 : f32 to vector<8x128xf32>
    %c0_i32 = arith.constant 0 : i32
    %c4_i32 = arith.constant 4 : i32
    %20 = arith.addi %c0_i32, %c4_i32 : i32
    %c1_i32 = arith.constant 1 : i32
    %21 = scf.for %arg10 = %c0_i32 to %20 step %c1_i32 iter_args(%arg11 = %19) -> (vector<8x128xf32>)  : i32 {
      %23 = arith.index_cast %arg10 : i32 to index
      %c0_18 = arith.constant 0 : index
      %c0_19 = arith.constant 0 : index
      %24 = vector.load %arg6[%23, %c0_18, %c0_19] : memref<4x128x128xbf16, #tpu.memory_space<vmem>>, vector<1x128x128xbf16>
      %25 = vector.shape_cast %24 : vector<1x128x128xbf16> to vector<128x128xbf16>
      %cst_20 = arith.constant dense<0.000000e+00> : vector<8x128xf32>
      %26 = tpu.matmul %16, %25, %cst_20 {dimension_numbers = #tpu.dot_dimension_numbers<[1], [0], [0], [1], [0, 0, 1, 1], [], []>} : vector<8x128xbf16>, vector<128x128xbf16>, vector<8x128xf32> -> vector<8x128xf32>
      %27 = arith.index_cast %arg10 : i32 to index
      %c0_21 = arith.constant 0 : index
      %c0_22 = arith.constant 0 : index
      %28 = vector.load %arg7[%27, %c0_21, %c0_22] : memref<4x1x128xf32, #tpu.memory_space<vmem>>, vector<1x1x128xf32>
      %29 = vector.shape_cast %28 : vector<1x1x128xf32> to vector<1x128xf32>
      %30 = vector.broadcast %29 : vector<1x128xf32> to vector<8x128xf32>
      %31 = arith.addf %26, %30 : vector<8x128xf32>
      %cst_23 = arith.constant dense<0xFF800000> : vector<8xf32>
      %32 = vector.multi_reduction <maximumf>, %31, %cst_23 [1] : vector<8x128xf32> to vector<8xf32>
      %33 = vector.shape_cast %32 : vector<8xf32> to vector<8x1xf32>
      %34 = vector.broadcast %33 : vector<8x1xf32> to vector<8x128xf32>
      %35 = arith.subf %31, %34 : vector<8x128xf32>
      %36 = math.exp %35 : vector<8x128xf32>
      %cst_24 = arith.constant dense<0.000000e+00> : vector<8xf32>
      %37 = vector.multi_reduction <add>, %36, %cst_24 [1] : vector<8x128xf32> to vector<8xf32>
      %38 = vector.shape_cast %37 : vector<8xf32> to vector<8x1xf32>
      %39 = tpu.reciprocal %38 {approx = true} : vector<8x1xf32> -> vector<8x1xf32>
      %40 = vector.broadcast %39 : vector<8x1xf32> to vector<8x128xf32>
      %41 = arith.mulf %36, %40 : vector<8x128xf32>
      %cst_25 = arith.constant 1.000000e-03 : f32
      %42 = vector.broadcast %cst_25 : f32 to vector<8x128xf32>
      %43 = arith.maximumf %41, %42 : vector<8x128xf32>
      %44 = vector.broadcast %17 : vector<1x128xf32> to vector<8x128xf32>
      %45 = arith.mulf %43, %44 : vector<8x128xf32>
      %cst_26 = arith.constant dense<0.000000e+00> : vector<8xf32>
      %46 = vector.multi_reduction <add>, %45, %cst_26 [1] : vector<8x128xf32> to vector<8xf32>
      %47 = vector.shape_cast %46 : vector<8xf32> to vector<8x1xf32>
      %48 = vector.broadcast %arg10 : i32 to vector<8x128xi32>
      %49 = arith.cmpi eq, %18, %48 : vector<8x128xi32>
      %cst_27 = arith.constant 0.000000e+00 : f32
      %50 = vector.shape_cast %47 : vector<8x1xf32> to vector<8x1xf32>
      %51 = vector.broadcast %50 : vector<8x1xf32> to vector<8x128xf32>
      %52 = vector.broadcast %cst_27 : f32 to vector<8x128xf32>
      %53 = arith.select %49, %51, %52 : vector<8x128xi1>, vector<8x128xf32>
      %54 = arith.addf %arg11, %53 : vector<8x128xf32>
      scf.yield %54 : vector<8x128xf32>
    }
    %c4_i32_15 = arith.constant 4 : i32
    %c0_16 = arith.constant 0 : index
    %c0_17 = arith.constant 0 : index
    %22 = vector.load %arg9[%c0_16, %c0_17] : memref<8x128xf32, #tpu.memory_space<vmem>>, vector<8x128xf32>
    tpu.vector_store %arg9[%c0_16, %c0_17], %21 {strides = array<i32>} : memref<8x128xf32, #tpu.memory_space<vmem>>, vector<8x128xf32>,
    return
  }
  func.func @transform_0(%arg0: i32) -> (i32, i32) {
    %c0_i32 = arith.constant 0 : i32
    %c0_i32_0 = arith.constant 0 : i32
    return %arg0, %c0_i32 : i32, i32
  }
  func.func @transform_1(%arg0: i32) -> (i32, i32) {
    %c0_i32 = arith.constant 0 : i32
    %c0_i32_0 = arith.constant 0 : i32
    %c0_i32_1 = arith.constant 0 : i32
    return %c0_i32, %c0_i32_0 : i32, i32
  }
  func.func @transform_2(%arg0: i32) -> (i32, i32) {
    %c0_i32 = arith.constant 0 : i32
    %c0_i32_0 = arith.constant 0 : i32
    %c0_i32_1 = arith.constant 0 : i32
    return %c0_i32, %c0_i32_0 : i32, i32
  }
  func.func @transform_3(%arg0: i32) -> (i32, i32) {
    %c0_i32 = arith.constant 0 : i32
    %c0_i32_0 = arith.constant 0 : i32
    %c0_i32_1 = arith.constant 0 : i32
    return %c0_i32, %c0_i32_0 : i32, i32
  }
  func.func @transform_4(%arg0: i32) -> (i32, i32) {
    %c0_i32 = arith.constant 0 : i32
    %c0_i32_0 = arith.constant 0 : i32
    %c0_i32_1 = arith.constant 0 : i32
    return %c0_i32, %c0_i32_0 : i32, i32
  }
  func.func @transform_5(%arg0: i32) -> (i32, i32, i32) {
    %c0_i32 = arith.constant 0 : i32
    %c0_i32_0 = arith.constant 0 : i32
    %c0_i32_1 = arith.constant 0 : i32
    %c0_i32_2 = arith.constant 0 : i32
    return %c0_i32, %c0_i32_0, %c0_i32_1 : i32, i32, i32
  }
  func.func @transform_6(%arg0: i32) -> (i32, i32, i32) {
    %c0_i32 = arith.constant 0 : i32
    %c0_i32_0 = arith.constant 0 : i32
    %c0_i32_1 = arith.constant 0 : i32
    %c0_i32_2 = arith.constant 0 : i32
    return %c0_i32, %c0_i32_0, %c0_i32_1 : i32, i32, i32
  }
  func.func @transform_7(%arg0: i32) -> (i32, i32) {
    %c0_i32 = arith.constant 0 : i32
    %c0_i32_0 = arith.constant 0 : i32
    %c0_i32_1 = arith.constant 0 : i32
    return %c0_i32, %c0_i32_0 : i32, i32
  }
  func.func @transform_8(%arg0: i32) -> (i32, i32) {
    %c0_i32 = arith.constant 0 : i32
    %c0_i32_0 = arith.constant 0 : i32
    return %arg0, %c0_i32 : i32, i32
  }
}

</mosaic_0001>

<bundles_post_ra>
// kernel: categorical_forward.1
= control target key start
LH: loop header
LB: loop body
LE: loop exit
PB: predicated region body
PF: predicated region fallthrough
CT: control target
= control target key end

     0   :  { %13 = vsyncpa [#allocation3], 0  ;;  %s821_s0 = inlined_call_operand.vmem [shape: bf16[8,128], index: 0, kind: input, shape index: {}]   ;;  %s822_s1 = inlined_call_operand.hbm [shape: bf16[128,128], index: 1, kind: input, shape index: {}]   ;;  %s823_s2 = inlined_call_operand.vmem [shape: f32[1,128], index: 2, kind: input, shape index: {}]   ;;  %s824_s3 = inlined_call_operand.hbm [shape: bf16[128,128], index: 3, kind: input, shape index: {}]   ;;  %s825_s4 = inlined_call_operand.vmem [shape: f32[1,128], index: 4, kind: input, shape index: {}]   ;;  %s826_s5 = inlined_call_operand.hbm [shape: bf16[4,128,128], index: 5, kind: input, shape index: {}]   ;;  %s827_s6 = inlined_call_operand.vmem [shape: f32[4,1,128], index: 6, kind: input, shape index: {}]   ;;  %s828_s7 = inlined_call_operand.vmem [shape: f32[1,128], index: 7, kind: input, shape index: {}]   ;;  %s829_s8 = inlined_call_operand.vmem [shape: f32[8,128], index: 8, kind: output, shape index: {}]  }
   0x1   :  { %14 = vsyncpa [#allocation5], 0  ;;  %s715_s27 = smov [#allocation4]   ;;  %s716_s29 = smov [#allocation2]  }
   0x2   :  { %s36_s28 = sshll.u32 %s715_s27, 4  ;;  %s22_s30 = sshll.u32 %s716_s29, 4  ;;  %s37_s28 = int_to_ptr.vmem [resolvable:$true] %s36_s28  ;;  %s23_s30 = int_to_ptr.vmem [resolvable:$true] %s22_s30 }
   0x3   :  { %s643_s9 = scalar_lea.vmem %s37_s28, 1024  ;;  %p648_p1 = scmp.lt.s32.totalorder %s37_s28, %s37_s28 }
   0x4   :  { %p644_p0 = scmp.ne.s32.totalorder %s37_s28, %s643_s9  ;;  %p649_p2 = scmp.lt.s32.totalorder %s643_s9, %s643_s9 }
   0x6   :  { %p650_p3 = por %p649_p2, %p648_p1 }
   0x8   :  { %p651_p4 = pnand %p650_p3, %p644_p0 }
   0xa   :  { %654 = shalt.err (!%p651_p4)
}
   0xb   :  { %s717_s10 = smov 64   ;;  %s718_s11 = smov 4  }
   0xc   :  { %42 = dma.hbm_to_vmem [thread:$0]  %s824_s3, 1024, %s37_s28, [#allocation5], %s717_s10, %s717_s10, %s718_s11  }
   0xd   :  { %s663_s14 = scalar_lea.vmem %s23_s30, 1024  ;;  %p668_p6 = scmp.lt.s32.totalorder %s23_s30, %s23_s30 }
   0xe   :  { %p664_p5 = scmp.ne.s32.totalorder %s23_s30, %s663_s14  ;;  %p669_p7 = scmp.lt.s32.totalorder %s663_s14, %s663_s14 }
  0x10   :  { %p670_p8 = por %p669_p7, %p668_p6 }
  0x12   :  { %p671_p9 = pnand %p670_p8, %p664_p5 }
  0x14   :  { %674 = shalt.err (!%p671_p9)
}
  0x15   :  { %28 = dma.hbm_to_vmem [thread:$0]  %s822_s1, 1024, %s23_s30, [#allocation3], %s717_s10, %s717_s10, %s718_s11  }
  0x16   :  { %s719_s17 = smov [#allocation6]  }
  0x17   :  { %s50_s18 = sshll.u32 %s719_s17, 4  ;;  %s51_s18 = int_to_ptr.vmem [resolvable:$true] %s50_s18 }
  0x18   :  { %s683_s19 = scalar_lea.vmem %s51_s18, 4096  ;;  %p688_p11 = scmp.lt.s32.totalorder %s51_s18, %s51_s18 }
  0x19   :  { %p684_p10 = scmp.ne.s32.totalorder %s51_s18, %s683_s19  ;;  %p689_p12 = scmp.lt.s32.totalorder %s683_s19, %s683_s19 }
  0x1b   :  { %p690_p13 = por %p689_p12, %p688_p11 }
  0x1d   :  { %p691_p0 = pnand %p690_p13, %p684_p10 }
  0x1f   :  { %694 = shalt.err (!%p691_p0)
}
  0x20   :  { %56 = dma.hbm_to_vmem [thread:$0]  %s826_s5, 4096, %s51_s18, [#allocation5], %s717_s10, %s717_s10, %s718_s11  }
  0x21   :  { %703 = dma.done.wait [#allocation3], 1024  }
  0x22   :  { %704 = vsyncadd [#allocation3], 4294966272 }
  0x23   :  { %705 = dma.done.wait [#allocation5], 5120  }
  0x24   :  { %706 = vsyncadd [#allocation5], 4294962176  ;;  %v720_v0 = vmov 0.0   ;;  %vm721_vm0 = vmmov 0   ;;  %v781_v1 = vld [vmem:[%s828_s7] ss:$0 sm:$0xff]  ;;  %v299_v27 = vlaneseq }
  0x25   :  { %522 = vmatprep.subr.bf16.mxu0 %v720_v0  ;;  %538 = vmatprep.mubr.msk.bf16.mxu0 %vm721_vm0, %v720_v0  ;;  %v607_v2 = vld [vmem:[#allocation2 + $0x38] sm:$0xff]   ;;  %v608_v3 = vld [vmem:[#allocation2 + $0x30] sm:$0xff]   ;;  %v609_v4 = vld [vmem:[#allocation2 + $0x28] sm:$0xff]   ;;  %v796_v37 = vmov 0.0  }
  0x26   :  { %542 = vmatprep.subr.bf16.mxu1 %v720_v0  ;;  %558 = vmatprep.mubr.msk.bf16.mxu1 %vm721_vm0, %v720_v0  ;;  %v615_v5 = vld [vmem:[#allocation4 + $0x38] sm:$0xff]   ;;  %v610_v6 = vld [vmem:[#allocation2 + $0x20] sm:$0xff]   ;;  %v616_v7 = vld [vmem:[#allocation4 + $0x30] sm:$0xff]   ;;  %v789_v28 = vand.u32 127, %v299_v27 }
  0x27   :  { %523 = vmatpush3.bf16.msra.mxu0 %v607_v2  ;;  %543 = vmatpush3.bf16.msra.mxu1 %v615_v5  ;;  %v611_v8 = vld [vmem:[#allocation2 + $0x18] sm:$0xff]   ;;  %v617_v9 = vld [vmem:[#allocation4 + $0x28] sm:$0xff]   ;;  %v612_v10 = vld [vmem:[#allocation2 + $0x10] sm:$0xff]  }
  0x28   :  { %524 = vmatprep.subr.bf16.mxu0 %v720_v0  ;;  %544 = vmatprep.subr.bf16.mxu1 %v720_v0  ;;  %v618_v11 = vld [vmem:[#allocation4 + $0x20] sm:$0xff]   ;;  %v613_v12 = vld [vmem:[#allocation2 + $0x8] sm:$0xff]   ;;  %v619_v13 = vld [vmem:[#allocation4 + $0x18] sm:$0xff]  }
  0x29   :  { %v614_v14 = vld [vmem:[#allocation2] sm:$0xff]   ;;  %v620_v15 = vld [vmem:[#allocation4 + $0x10] sm:$0xff]   ;;  %v621_v17 = vld [vmem:[#allocation4 + $0x8] sm:$0xff]  }
  0x2a   :  { %v71_v16 = vld [vmem:[%s821_s0] sm:$0xf] }
  0x2b   :  { %525 = vmatpush3.bf16.msra.mxu0 %v608_v3  ;;  %545 = vmatpush3.bf16.msra.mxu1 %v616_v7  ;;  %v622_v18 = vld [vmem:[#allocation4] sm:$0xff]  }
  0x2c   :  { %526 = vmatprep.subr.bf16.mxu0 %v720_v0  ;;  %546 = vmatprep.subr.bf16.mxu1 %v720_v0  ;;  %v464_v19 = vld [vmem:[%s823_s2] ss:$0 sm:$0xff]  ;;  %s798_s2 = smov 0  }
  0x2d   :  { %v473_v29 = vld [vmem:[%s825_s4] ss:$0 sm:$0xff] }
  0x2f   :  { %527 = vmatpush3.bf16.msra.mxu0 %v609_v4  ;;  %547 = vmatpush3.bf16.msra.mxu1 %v617_v9 }
  0x30   :  { %528 = vmatprep.subr.bf16.mxu0 %v720_v0  ;;  %548 = vmatprep.subr.bf16.mxu1 %v720_v0 }
  0x33   :  { %529 = vmatpush3.bf16.msra.mxu0 %v610_v6  ;;  %549 = vmatpush3.bf16.msra.mxu1 %v618_v11 }
  0x34   :  { %530 = vmatprep.subr.bf16.mxu0 %v720_v0  ;;  %550 = vmatprep.subr.bf16.mxu1 %v720_v0 }
  0x37   :  { %531 = vmatpush3.bf16.msra.mxu0 %v611_v8  ;;  %551 = vmatpush3.bf16.msra.mxu1 %v619_v13 }
  0x38   :  { %532 = vmatprep.subr.bf16.mxu0 %v720_v0  ;;  %552 = vmatprep.subr.bf16.mxu1 %v720_v0 }
  0x3b   :  { %533 = vmatpush3.bf16.msra.mxu0 %v612_v10  ;;  %553 = vmatpush3.bf16.msra.mxu1 %v620_v15 }
  0x3c   :  { %534 = vmatprep.subr.bf16.mxu0 %v720_v0  ;;  %554 = vmatprep.subr.bf16.mxu1 %v720_v0 }
  0x3f   :  { %535 = vmatpush3.bf16.msra.mxu0 %v613_v12  ;;  %555 = vmatpush3.bf16.msra.mxu1 %v621_v17 }
  0x40   :  { %536 = vmatprep.subr.bf16.mxu0 %v720_v0  ;;  %556 = vmatprep.subr.bf16.mxu1 %v720_v0 }
  0x43   :  { %537 = vmatpush3.bf16.msra.mxu0 %v614_v14  ;;  %557 = vmatpush3.bf16.msra.mxu1 %v622_v18 }
  0x46   :  { %539 = vmatmul.mubr.bf16.vlgmr.msra.gmra.mxu0 %v71_v16 }
 0x106   :  { %v177_v20 = vpop.f32.mrf.mxu0 }
 0x107   :  { %v178_v21 = vadd.f32 %v464_v19, %v177_v20 }
 0x108   :  { %v540_v22 = vpop.f32.mrf.mxu0 }
 0x109   :  { %v183_v23 = vmax.f32 %v178_v21, 0.0 }
 0x10a   :  { %v180_v24 = vpop.f32.mrf.mxu0 }
 0x10b   :  { %v184_v25 = vpack.c.bf16 %v183_v23, %v183_v23 }
 0x10c   :  { %v541_v26 = vpop.f32.mrf.mxu0 }
 0x10d   :  { %559 = vmatmul.mubr.bf16.vlgmr.msra.gmra.mxu1 %v184_v25 }
 0x1cd   :  { %v290_v30 = vpop.f32.mrf.mxu1 }
 0x1ce   :  { %v291_v31 = vadd.f32 %v473_v29, %v290_v30 }
 0x1cf   :  { %v560_v32 = vpop.f32.mrf.mxu1 }
 0x1d0   :  { %v296_v33 = vmax.f32 %v291_v31, 0.0 }
 0x1d1   :  { %v293_v34 = vpop.f32.mrf.mxu1 }
 0x1d2   :  { %v794_v35 = vpack.c.bf16 %v296_v33, %v296_v33 }
 0x1d3   :  { %v561_v36 = vpop.f32.mrf.mxu1 }
 0x1d4 LB: > { %v722_v38 = vmov 0.0   ;;  %vm723_vm1 = vmmov 0   ;;  %s494_s4 = sshll.u32 %s713_s2, 6  ;;  %s327_s28 = scalar_lea.vmem %s827_s6, %s713_s2  ;;  %v442_v62 = vstv %s713_s2  ;;  %s713_s2 = sphi %s798_s2, %s306_s2   ;;  %v709_v37 = vphi %v796_v37, %v830_v37  }
 0x1d5   : > { %562 = vmatprep.subr.bf16.mxu0 %v722_v38  ;;  %578 = vmatprep.mubr.msk.bf16.mxu0 %vm723_vm1, %v722_v38  ;;  %s310_s25 = scalar_lea.vmem [#allocation6], %s494_s4  ;;  %v484_v47 = vld [vmem:[%s327_s28] ss:$0 sm:$0xff]  ;;  %vm443_vm2 = vcmp.eq.s32.totalorder %v789_v28, %v442_v62  ;;  %s306_s2 = sadd.s32 1, %s713_s2  }
 0x1d6   : > { %v623_v39 = vld [vmem:[%s310_s25 + $0x38] sm:$0xff]   ;;  %v624_v40 = vld [vmem:[%s310_s25 + $0x30] sm:$0xff]   ;;  %v625_v41 = vld [vmem:[%s310_s25 + $0x28] sm:$0xff]   ;;  %p303_p1 = scmp.ge.s32.totalorder %s306_s2, 4  }
 0x1d7   : > { %563 = vmatpush3.bf16.msra.mxu0 %v623_v39  ;;  %v626_v42 = vld [vmem:[%s310_s25 + $0x20] sm:$0xff]   ;;  %v627_v43 = vld [vmem:[%s310_s25 + $0x18] sm:$0xff]   ;;  %v628_v44 = vld [vmem:[%s310_s25 + $0x10] sm:$0xff]  }
 0x1d8   : > { %564 = vmatprep.subr.bf16.mxu0 %v722_v38  ;;  %v629_v45 = vld [vmem:[%s310_s25 + $0x8] sm:$0xff]   ;;  %v630_v46 = vld [vmem:[%s310_s25] sm:$0xff]  }
 0x1db   : > { %565 = vmatpush3.bf16.msra.mxu0 %v624_v40 }
 0x1dc   : > { %566 = vmatprep.subr.bf16.mxu0 %v722_v38 }
 0x1df   : > { %567 = vmatpush3.bf16.msra.mxu0 %v625_v41 }
 0x1e0   : > { %568 = vmatprep.subr.bf16.mxu0 %v722_v38 }
 0x1e3   : > { %569 = vmatpush3.bf16.msra.mxu0 %v626_v42 }
 0x1e4   : > { %570 = vmatprep.subr.bf16.mxu0 %v722_v38 }
 0x1e7   : > { %571 = vmatpush3.bf16.msra.mxu0 %v627_v43 }
 0x1e8   : > { %572 = vmatprep.subr.bf16.mxu0 %v722_v38 }
 0x1eb   : > { %573 = vmatpush3.bf16.msra.mxu0 %v628_v44 }
 0x1ec   : > { %574 = vmatprep.subr.bf16.mxu0 %v722_v38 }
 0x1ef   : > { %575 = vmatpush3.bf16.msra.mxu0 %v629_v45 }
 0x1f0   : > { %576 = vmatprep.subr.bf16.mxu0 %v722_v38 }
 0x1f3   : > { %577 = vmatpush3.bf16.msra.mxu0 %v630_v46 }
 0x1f6   : > { %579 = vmatmul.mubr.bf16.vlgmr.msra.gmra.mxu0 %v794_v35 }
 0x2b6   : > { %v417_v48 = vpop.f32.mrf.mxu0 }
 0x2b7   : > { %v418_v49 = vadd.f32 %v484_v47, %v417_v48 }
 0x2b8   : > { %v580_v50 = vpop.f32.mrf.mxu0 }
 0x2b9   : > { %423 = vmax.xlane.f32.xlu0 %v418_v49 }
 0x2ba   : > { %v420_v51 = vpop.f32.mrf.mxu0 }
 0x2bc   : > { %v581_v52 = vpop.f32.mrf.mxu0 }
 0x342   : > { %v424_v53 = vpop.xlane.xlu0 %423 }
 0x343   : > { %v425_v54 = vsub.f32 %v418_v49, %v424_v53 }
 0x345   : > { %v426_v55 = vmul.f32 1.442695, %v425_v54 }
 0x347   : > { %631 = vpow2.f32 %v426_v55 }
 0x354   : > { %v632_v56 = vpop.eup %631 }
 0x355   : > { %428 = vadd.xlane.f32.xlu0 %v632_v56 }
 0x3de   : > { %v429_v57 = vpop.xlane.xlu0 %428 }
 0x3df   : > { %633 = vrcp.f32 %v429_v57 }
 0x3ec   : > { %v634_v58 = vpop.eup %633 }
 0x3ed   : > { %v431_v59 = vmul.f32 %v634_v58, %v632_v56 }
 0x3ef   : > { %v432_v60 = vmax.f32 %v431_v59, 0.001 }
 0x3f1   : > { %v439_v61 = vmul.f32 %v781_v1, %v432_v60 }
 0x3f3   : > { %440 = vadd.xlane.f32.xlu1 %v439_v61 }
 0x47c   : > { %v441_v63 = vpop.xlane.xlu1 %440  ;;  %305 = sbr.rel (!%p303_p1) target bundleno = 468 (0x1d4), region = 73 }
 0x47d   : > { %v444_v0 = vsel %vm443_vm2, %v441_v63, 0.0 }
 0x47e   : > { %v445_v2 = vadd.f32 %v709_v37, %v444_v0  }
 0x480   : > { %v830_v37 = vmov %v445_v2  ;;  %446 = vst [vmem:[%s829_s8] sm:$0xff] (%p303_p1), %v445_v2 }
 0x481   :  { %451 = vsyncpa [#allocation3], 1 }
 0x482   :  { %452 = vsyncpa [#allocation5], 1 }

</bundles_post_ra>
